<compile_context>
chip_gen: v5e
topology: v5e:2x2
jax: 0.10.0
libtpu: 0.0.40
codegen_flags: <defaults>
</compile_context>

<pallas_src>
from functools import partial

import numpy as np
import jax
import jax.numpy as jnp
from jax import lax
from jax.experimental import pallas as pl
from jax.experimental.pallas import tpu as pltpu


def _round_up(x: int, m: int) -> int:
    return ((x + m - 1) // m) * m


def _user_kernel(idx_ref, w_ref, out_ref, *, offsets):
    # idx_ref: (TB, 4) int32   -- raw per-sample indices into the 4 tables.
    # w_ref:   (R_pad, 4*D)    -- block-diagonal combined embedding table.
    # out_ref: (TB, 4*D)       -- concatenated embeddings for this batch tile.
    # offsets: static python ints -- per-table row offset inside W.
    TB = idx_ref.shape[0]
    R = w_ref.shape[0]

    idx = idx_ref[...]                                           # (TB, 4) int32
    rows = lax.broadcasted_iota(jnp.int32, (TB, R), 1)           # (TB, R)

    # OR of four disjoint-range compares, then a single cast -> one-hot.
    hit = rows == (idx[:, 0:1] + offsets[0])
    for j in range(1, 4):
        hit = hit | (rows == (idx[:, j:j + 1] + offsets[j]))
    onehot = hit.astype(w_ref.dtype)                             # exact 0/1

    out_ref[...] = jnp.dot(
        onehot, w_ref[...],
        preferred_element_type=jnp.float32).astype(out_ref.dtype)


def _build_combined_table(tables, *, min_rows=128):
    """Host-side (numpy) block-diagonal combined table + static row offsets."""
    D = int(tables[0].shape[1])
    n_tables = len(tables)
    total_rows = sum(int(t.shape[0]) for t in tables)
    R_pad = max(_round_up(total_rows, 8), min_rows)   # pad rows to >= 128
    dtype = np.asarray(tables[0]).dtype
    W = np.zeros((R_pad, n_tables * D), dtype=dtype)
    offsets, off = [], 0
    for j, t in enumerate(tables):
        t_np = np.asarray(t)
        n = t_np.shape[0]
        W[off:off + n, j * D:(j + 1) * D] = t_np
        offsets.append(off)
        off += n
    return jnp.asarray(W), tuple(offsets)


def make_user_forward(emb_gender, emb_age, emb_occupation, emb_area,
                      *, tb_cap=2048, small_batch_threshold=0):
    """Builds the combined table once and returns a jitted forward fn."""
    tables = (emb_gender, emb_age, emb_occupation, emb_area)
    D = int(emb_gender.shape[1])
    concat_dim = 4 * D
    # NOTE: concat_dim = 128 for D = 32 (lane-dense stores). If D ever shrinks
    # below 32, pad the combined table's last dim to a 128 multiple and slice
    # in the wrapper to keep stores unmasked.
    W, offsets = _build_combined_table(tables)        # built ONCE, hoisted
    R_pad = int(W.shape[0])
    kernel = partial(_user_kernel, offsets=offsets)

    def forward(gender_idx, age_idx, occupation_idx, area_idx):
        batch = int(gender_idx.shape[0])

        if batch <= small_batch_threshold:
            # Tiny-batch bypass: plain XLA gathers, no dedicated kernel launch.
            return jnp.concatenate(
                [emb_gender[gender_idx], emb_age[age_idx],
                 emb_occupation[occupation_idx], emb_area[area_idx]], axis=1)

        idx = jnp.stack(
            [gender_idx.astype(jnp.int32), age_idx.astype(jnp.int32),
             occupation_idx.astype(jnp.int32), area_idx.astype(jnp.int32)],
            axis=1)                                             # (batch, 4)

        # Tile selection: minimal padding, big tiles, and >= 2 grid steps when
        # there is enough work (v7x megacore: 2 TensorCores per chip).
        n_steps = pl.cdiv(batch, tb_cap)
        if n_steps == 1 and batch >= 256:
            n_steps = 2
        TB = _round_up(pl.cdiv(batch, n_steps), 8)
        batch_pad = _round_up(batch, TB)
        if batch_pad != batch:
            # Zero-padded indices map to valid rows (offset_j + 0); sliced off.
            idx = jnp.pad(idx, ((0, batch_pad - batch), (0, 0)))
        grid = (batch_pad // TB,)

        out = pl.pallas_call(
            kernel,
            out_shape=jax.ShapeDtypeStruct((batch_pad, concat_dim), W.dtype),
            grid=grid,
            in_specs=[
                pl.BlockSpec((TB, 4), lambda i: (i, 0)),              # indices
                pl.BlockSpec((R_pad, concat_dim), lambda i: (0, 0)),  # table
            ],
            out_specs=pl.BlockSpec((TB, concat_dim), lambda i: (i, 0)),
            compiler_params=pltpu.CompilerParams(
                dimension_semantics=("parallel",)),
        )(idx, W)

        return out[:batch] if batch_pad != batch else out

    return jax.jit(forward)


if __name__ == "__main__":
    # Config (small, consistent with the module's __init__ fields).
    num_gender, num_age, num_occupation, num_zipcode = 2, 7, 21, 10
    embedding_dim = 32
    batch = 8

    key = jax.random.PRNGKey(0)
    k_g, k_a, k_o, k_z, k_ig, k_ia, k_io, k_iz = jax.random.split(key, 8)

    # Deterministic parameter init (matches nn.Embedding default: N(0, 1)).
    emb_gender = jax.random.normal(k_g, (num_gender, embedding_dim), jnp.float32)
    emb_age = jax.random.normal(k_a, (num_age, embedding_dim), jnp.float32)
    emb_occupation = jax.random.normal(k_o, (num_occupation, embedding_dim), jnp.float32)
    emb_area = jax.random.normal(k_z, (num_zipcode, embedding_dim), jnp.float32)

    gender_idx = jax.random.randint(k_ig, (batch,), 0, num_gender, jnp.int32)
    age_idx = jax.random.randint(k_ia, (batch,), 0, num_age, jnp.int32)
    occupation_idx = jax.random.randint(k_io, (batch,), 0, num_occupation, jnp.int32)
    area_idx = jax.random.randint(k_iz, (batch,), 0, num_zipcode, jnp.int32)

    # small_batch_threshold=0 so the demo exercises the Pallas kernel even at
    # batch=8 (in production set it to ~256 to skip kernel launch overhead).
    user_forward = make_user_forward(emb_gender, emb_age, emb_occupation,
                                     emb_area, small_batch_threshold=0)

    out = user_forward(gender_idx, age_idx, occupation_idx, area_idx)
    out = jax.block_until_ready(out)

    # Pure-JAX reference check (torch.cat of the four table lookups, axis=1).
    ref = jnp.concatenate(
        [emb_gender[gender_idx], emb_age[age_idx],
         emb_occupation[occupation_idx], emb_area[area_idx]], axis=1)

    assert out.shape == (batch, 4 * embedding_dim), out.shape
    assert jnp.allclose(out, ref, atol=1e-5), "mismatch vs reference"
    print("KERNEL_OK")
</pallas_src>

<mosaic_0001>
module attributes {stable_mosaic.version = 11 : i64} {
  func.func @_user_kernel(%arg0: i32, %arg1: memref<8x4xi32, #tpu.memory_space<vmem>>, %arg2: memref<128x128xf32, #tpu.memory_space<vmem>>, %arg3: memref<8x128xf32, #tpu.memory_space<vmem>>) attributes {dimension_semantics = [#tpu.dimension_semantics<parallel>], iteration_bounds = array<i64: 1>, scalar_prefetch = 0 : i64, scratch_operands = 0 : i64, tpu.core_type = #tpu.core_type<tc>, window_params = [{transform_indices = @transform_0, window_bounds = array<i64: 8, 4>}, {pipeline_mode = #tpu.pipeline_mode<synchronous>, transform_indices = @transform_1, window_bounds = array<i64: 128, 128>}, {transform_indices = @transform_2, window_bounds = array<i64: 8, 128>}]} {
    %c0 = arith.constant 0 : index
    %c0_0 = arith.constant 0 : index
    %0 = vector.load %arg1[%c0, %c0_0] : memref<8x4xi32, #tpu.memory_space<vmem>>, vector<8x4xi32>
    %1 = tpu.iota {dimensions = array<i32: 1>} : vector<8x128xi32>
    %2 = vector.extract_strided_slice %0 {offsets = [0, 0], sizes = [8, 1], strides = [1, 1]} : vector<8x4xi32> to vector<8x1xi32>
    %c0_i32 = arith.constant 0 : i32
    %3 = vector.broadcast %c0_i32 : i32 to vector<8x1xi32>
    %4 = arith.addi %2, %3 : vector<8x1xi32>
    %5 = vector.broadcast %4 : vector<8x1xi32> to vector<8x128xi32>
    %6 = arith.cmpi eq, %1, %5 : vector<8x128xi32>
    %7 = vector.extract_strided_slice %0 {offsets = [0, 1], sizes = [8, 1], strides = [1, 1]} : vector<8x4xi32> to vector<8x1xi32>
    %c2_i32 = arith.constant 2 : i32
    %8 = vector.broadcast %c2_i32 : i32 to vector<8x1xi32>
    %9 = arith.addi %7, %8 : vector<8x1xi32>
    %10 = vector.broadcast %9 : vector<8x1xi32> to vector<8x128xi32>
    %11 = arith.cmpi eq, %1, %10 : vector<8x128xi32>
    %12 = arith.ori %6, %11 : vector<8x128xi1>
    %13 = vector.extract_strided_slice %0 {offsets = [0, 2], sizes = [8, 1], strides = [1, 1]} : vector<8x4xi32> to vector<8x1xi32>
    %c9_i32 = arith.constant 9 : i32
    %14 = vector.broadcast %c9_i32 : i32 to vector<8x1xi32>
    %15 = arith.addi %13, %14 : vector<8x1xi32>
    %16 = vector.broadcast %15 : vector<8x1xi32> to vector<8x128xi32>
    %17 = arith.cmpi eq, %1, %16 : vector<8x128xi32>
    %18 = arith.ori %12, %17 : vector<8x128xi1>
    %19 = vector.extract_strided_slice %0 {offsets = [0, 3], sizes = [8, 1], strides = [1, 1]} : vector<8x4xi32> to vector<8x1xi32>
    %c30_i32 = arith.constant 30 : i32
    %20 = vector.broadcast %c30_i32 : i32 to vector<8x1xi32>
    %21 = arith.addi %19, %20 : vector<8x1xi32>
    %22 = vector.broadcast %21 : vector<8x1xi32> to vector<8x128xi32>
    %23 = arith.cmpi eq, %1, %22 : vector<8x128xi32>
    %24 = arith.ori %18, %23 : vector<8x128xi1>
    %25 = arith.extui %24 : vector<8x128xi1> to vector<8x128xi32>
    %26 = arith.sitofp %25 : vector<8x128xi32> to vector<8x128xf32>
    %c0_1 = arith.constant 0 : index
    %c0_2 = arith.constant 0 : index
    %27 = vector.load %arg2[%c0_1, %c0_2] : memref<128x128xf32, #tpu.memory_space<vmem>>, vector<128x128xf32>
    %cst = arith.constant dense<0.000000e+00> : vector<8x128xf32>
    %28 = tpu.matmul %26, %27, %cst {dimension_numbers = #tpu.dot_dimension_numbers<[1], [0], [0], [1], [0, 0, 1, 1], [], []>} : vector<8x128xf32>, vector<128x128xf32>, vector<8x128xf32> -> vector<8x128xf32>
    %c0_3 = arith.constant 0 : index
    %c0_4 = arith.constant 0 : index
    %29 = vector.load %arg3[%c0_3, %c0_4] : memref<8x128xf32, #tpu.memory_space<vmem>>, vector<8x128xf32>
    tpu.vector_store %arg3[%c0_3, %c0_4], %28 {strides = array<i32>} : memref<8x128xf32, #tpu.memory_space<vmem>>, vector<8x128xf32>,
    return
  }
  func.func @transform_0(%arg0: i32) -> (i32, i32) {
    %c0_i32 = arith.constant 0 : i32
    %c0_i32_0 = arith.constant 0 : i32
    return %arg0, %c0_i32 : i32, i32
  }
  func.func @transform_1(%arg0: i32) -> (i32, i32) {
    %c0_i32 = arith.constant 0 : i32
    %c0_i32_0 = arith.constant 0 : i32
    %c0_i32_1 = arith.constant 0 : i32
    return %c0_i32, %c0_i32_0 : i32, i32
  }
  func.func @transform_2(%arg0: i32) -> (i32, i32) {
    %c0_i32 = arith.constant 0 : i32
    %c0_i32_0 = arith.constant 0 : i32
    return %arg0, %c0_i32 : i32, i32
  }
}

</mosaic_0001>

<bundles_post_ra>
// kernel: forward.1
= control target key start
LH: loop header
LB: loop body
LE: loop exit
PB: predicated region body
PF: predicated region fallthrough
CT: control target
= control target key end

     0   :  { %7 = vsyncpa [#allocation3], 0  ;;  %s210_s0 = inlined_call_operand.vmem [shape: s32[8,4], index: 0, kind: input, shape index: {}]   ;;  %s211_s1 = inlined_call_operand.hbm [shape: f32[128,128], index: 1, kind: input, shape index: {}]   ;;  %s212_s2 = inlined_call_operand.hbm [shape: f32[8,128], index: 2, kind: output, shape index: {}]  }
   0x1   :  { %8 = vsyncpa [#allocation4], 0  ;;  %s15_s11 = sshll.u32 %s211_s1, 4  ;;  %s177_s12 = smov [#allocation2]   ;;  %s16_s11 = int_to_ptr.hbm [resolvable:$true] %s15_s11 }
   0x2   :  { %s17_s13 = sshll.u32 %s177_s12, 4  ;;  %s178_s14 = smov 128   ;;  %s18_s13 = int_to_ptr.vmem [resolvable:$true] %s17_s13 }
   0x3   :  { %s179_s15 = smov 8  }
   0x4   :  { %23 = dma.hbm_to_vmem [thread:$0]  %s16_s11, 2048, %s18_s13, [#allocation3], %s178_s14, %s178_s14, %s179_s15  }
   0x5   :  { %173 = dma.done.wait [#allocation3], 2048  }
   0x6   :  { %174 = vsyncadd [#allocation3], 4294965248  ;;  %v180_v0 = vmov 0   ;;  %v181_v1 = vmov 2   ;;  %v28_v2 = vld [vmem:[%s210_s0] sm:$0xff]  ;;  %v70_v3 = vld [vmem:[#allocation2 + $0x78] sm:$0xff]  ;;  %v29_v25 = vlaneseq }
   0x7   :  { %120 = vset.pattern.permute.xlu0 %v180_v0  ;;  %122 = vset.pattern.permute.xlu1 %v181_v1  ;;  %v69_v4 = vld [vmem:[#allocation2 + $0x70] sm:$0xff]  ;;  %v41_v5 = vadd.s32 9, %v28_v2  ;;  %v68_v6 = vld [vmem:[#allocation2 + $0x68] sm:$0xff]  ;;  %v67_v7 = vld [vmem:[#allocation2 + $0x60] sm:$0xff]  ;;  %v35_v8 = vadd.s32 2, %v28_v2  ;;  %v47_v10 = vadd.s32 30, %v28_v2 }
   0x8   :  { %32 = vperm.xlu0 %120, %v28_v2   ;;  %71 = vmatpush.msra.mxu0 %v70_v3  ;;  %v66_v9 = vld [vmem:[#allocation2 + $0x58] sm:$0xff]  ;;  %v65_v11 = vld [vmem:[#allocation2 + $0x50] sm:$0xff]  ;;  %v182_v12 = vmov 1   ;;  %v64_v13 = vld [vmem:[#allocation2 + $0x48] sm:$0xff]  ;;  %v183_v14 = vmov 3   ;;  %v30_v27 = vand.u32 127, %v29_v25 }
   0x9   :  { %43 = vperm.xlu1 %122, %v41_v5   ;;  %v63_v15 = vld [vmem:[#allocation2 + $0x40] sm:$0xff]  ;;  %v62_v16 = vld [vmem:[#allocation2 + $0x38] sm:$0xff]  ;;  %v61_v17 = vld [vmem:[#allocation2 + $0x30] sm:$0xff]  ;;  %v184_v30 = vmov 1.0   ;;  %s185_s0 = smov [#allocation5]   ;;  %s99_s20 = sshll.u32 %s212_s2, 4  ;;  %s100_s20 = int_to_ptr.hbm [resolvable:$true] %s99_s20 }
   0xa   :  { %72 = vmatpush.msra.mxu0 %v69_v4  ;;  %v60_v18 = vld [vmem:[#allocation2 + $0x28] sm:$0xff]  ;;  %v59_v19 = vld [vmem:[#allocation2 + $0x20] sm:$0xff]  ;;  %v58_v20 = vld [vmem:[#allocation2 + $0x18] sm:$0xff]  ;;  %s97_s1 = sshll.u32 %s185_s0, 4  ;;  %s98_s1 = int_to_ptr.vmem [resolvable:$true] %s97_s1 }
   0xb   :  { %v57_v21 = vld [vmem:[#allocation2 + $0x10] sm:$0xff]  ;;  %v56_v22 = vld [vmem:[#allocation2 + $0x8] sm:$0xff]  ;;  %v55_v23 = vld [vmem:[#allocation2] sm:$0xff] }
   0xc   :  { %73 = vmatpush.msra.mxu0 %v68_v6 }
   0xe   :  { %74 = vmatpush.msra.mxu0 %v67_v7 }
  0x10   :  { %121 = vset.pattern.permute.xlu0 %v182_v12  ;;  %75 = vmatpush.msra.mxu0 %v66_v9 }
  0x11   :  { %37 = vperm.xlu0 %121, %v35_v8   ;;  %123 = vset.pattern.permute.xlu1 %v183_v14 }
  0x12   :  { %76 = vmatpush.msra.mxu0 %v65_v11  ;;  %49 = vperm.xlu1 %123, %v47_v10  }
  0x14   :  { %77 = vmatpush.msra.mxu0 %v64_v13 }
  0x16   :  { %78 = vmatpush.msra.mxu0 %v63_v15 }
  0x18   :  { %79 = vmatpush.msra.mxu0 %v62_v16 }
  0x19   :  { %124 = vset.pattern.permute.xlu0 %v183_v14 }
  0x1a   :  { %80 = vmatpush.msra.mxu0 %v61_v17 }
  0x1c   :  { %81 = vmatpush.msra.mxu0 %v60_v18 }
  0x1e   :  { %82 = vmatpush.msra.mxu0 %v59_v19 }
  0x20   :  { %83 = vmatpush.msra.mxu0 %v58_v20 }
  0x22   :  { %84 = vmatpush.msra.mxu0 %v57_v21 }
  0x24   :  { %85 = vmatpush.msra.mxu0 %v56_v22 }
  0x26   :  { %86 = vmatpush.msra.mxu0 %v55_v23 }
  0x7a   :  { %v33_v24 = vpop.permute.xlu0 %32 }
  0x7b   :  { %v44_v26 = vpop.permute.xlu1 %43  ;;  %vm34_vm0 = vcmp.eq.s32.totalorder %v30_v27, %v33_v24 }
  0x7c   :  { %vm45_vm2 = vcmp.eq.s32.totalorder %v30_v27, %v44_v26 }
  0x83   :  { %v38_v28 = vpop.permute.xlu0 %37 }
  0x84   :  { %vm39_vm1 = vcmp.eq.s32.totalorder %v30_v27, %v38_v28  ;;  %v50_v29 = vpop.permute.xlu1 %49 }
  0x85   :  { %vm40_vm3 = vmor %vm34_vm0, %vm39_vm1  ;;  %vm51_vm5 = vcmp.eq.s32.totalorder %v30_v27, %v50_v29 }
  0x86   :  { %vm46_vm4 = vmor %vm40_vm3, %vm45_vm2 }
  0x87   :  { %vm52_vm6 = vmor %vm46_vm4, %vm51_vm5 }
  0x88   :  { %110 = vmatmul.msk.f32.vlgmr.msra.gmra.mxu0 %vm52_vm6, %v184_v30 }
 0x105   :  { %v88_v31 = vpop.f32.mrf.mxu0 }
 0x106   :  { %91 = vst [vmem:[#allocation5] sm:$0xff] %v88_v31 }
 0x107   :  { %102 = dma.vmem_to_hbm [thread:$0]  %s98_s1, 128, %s100_s20, [#allocation4]  }
 0x108   :  { %175 = dma.done.wait [#allocation4], 128  }
 0x109   :  { %176 = vsyncadd [#allocation4], 4294967168 }
 0x10a   :  { %107 = vsyncpa [#allocation3], 1 }
 0x10b   :  { %108 = vsyncpa [#allocation4], 1 }

</bundles_post_ra>
